<compile_context>
chip_gen: v6e
topology: v6e:2x2x1
jax: 0.10.0
libtpu: 0.0.40
codegen_flags: <defaults>
</compile_context>

<pallas_src>
import jax
import jax.numpy as jnp
from jax import lax
from jax.experimental import pallas as pl
from jax.experimental.pallas import tpu as pltpu

IN_FEATURES = 768
HIDDEN = 256


def _nnue_kernel(x_ref, w1_ref, b1_ref, w2_ref, b2_ref, o_ref):
    # Layer 1 on the MXU: (TB, 768) @ (768, 256) -> (TB, 256), f32 accumulate.
    h = jnp.dot(x_ref[...], w1_ref[...], preferred_element_type=jnp.float32)
    h = jnp.maximum(h + b1_ref[...], 0.0)                      # bias + ReLU (VPU, f32)

    # Layer 2: contract the 256 hidden dim of w2 (1, 256) against dim 1 of h (TB, 256)
    # -> (1, TB).  This mirrors flash attention's q @ k^T (rhs contracted on its last
    # dim), so Mosaic feeds the MXU directly and the result lands lane-dense (batch in
    # lanes) -> full-lane output stores, no relayout of h.
    y = lax.dot_general(w2_ref[...], h, (((1,), (1,)), ((), ())),
                        preferred_element_type=jnp.float32)    # (1, TB)
    y = y + b2_ref[0]                                          # scalar bias from SMEM
    o_ref[...] = 1.0 / (1.0 + jnp.exp(-y))                     # sigmoid (exp on EUP)


def _round_up(n, m):
    return ((n + m - 1) // m) * m


def _plan_tiles(batch, block_b, row_align):
    """Pick (tile_rows, num_tiles) for the batch grid axis."""
    if batch <= 128:
        # Tiny serving batches: one tile, rounded only to the sublane multiple
        # (no 128-row over-fetch of x at e.g. B=8).
        return _round_up(batch, row_align), 1
    # Size the tile from the tile count (shrinks ragged-tail waste vs. a fixed block_b)
    # and keep >= 2 tiles so the "parallel" grid axis can shard across both v7x TCs.
    n = max(2, pl.cdiv(batch, block_b))
    tb = _round_up(pl.cdiv(batch, n), 128)
    return tb, pl.cdiv(batch, tb)


def prepare_nnue_params(w1, b1, w2, b2, *, compute_dtype=jnp.bfloat16):
    """Cast / reshape the weights ONCE, hoisted out of the per-call wrapper.

    w1 is stored transposed vs. torch.nn.Linear, i.e. (in, out) = (768, 256).
    Only the layer-1 operands are narrowed; everything else stays f32.
    """
    assert w1.shape == (IN_FEATURES, HIDDEN) and w2.shape == (HIDDEN, 1)
    return (w1.astype(compute_dtype),
            b1.reshape(1, HIDDEN).astype(jnp.float32),
            w2.reshape(1, HIDDEN).astype(jnp.float32),
            b2.reshape(1).astype(jnp.float32))


def simple_nnue(x, params, *, block_b=2048):
    """Forward pass of SimpleNNUE.  x: (B, 768) -> (B, 1) f32.

    For best performance pass x already in the compute dtype chosen in
    prepare_nnue_params (default bf16); a per-call cast costs an extra HBM pass over x.
    """
    w1, b1_row, w2_row, b2_vec = params
    B, F = x.shape
    assert F == IN_FEATURES

    if x.dtype != w1.dtype:
        # Slow path (extra HBM read+write over x); produce x upstream in the compute
        # dtype instead whenever possible.
        x = x.astype(w1.dtype)

    row_align = 16 if x.dtype == jnp.bfloat16 else 8
    tb, n = _plan_tiles(B, block_b, row_align)
    bp = n * tb   # only the (tiny, lane-dense) output is padded; x is never copied.

    out = pl.pallas_call(
        _nnue_kernel,
        out_shape=jax.ShapeDtypeStruct((1, bp), jnp.float32),
        grid_spec=pltpu.PrefetchScalarGridSpec(
            num_scalar_prefetch=0,
            grid=(n,),
            in_specs=[
                # x tiles: pipelined (double-buffered) per grid step.  The trailing
                # partial tile (B % tb != 0) reads unspecified rows that only reach
                # output lanes sliced off below.
                pl.BlockSpec((tb, IN_FEATURES), lambda i: (i, 0)),
                pl.BlockSpec((IN_FEATURES, HIDDEN), lambda i: (0, 0)),  # W1: VMEM-resident
                pl.BlockSpec((1, HIDDEN), lambda i: (0, 0)),            # b1
                pl.BlockSpec((1, HIDDEN), lambda i: (0, 0)),            # w2 as a row
                pl.BlockSpec(memory_space=pltpu.MemorySpace.SMEM),      # b2 scalar
            ],
            # Lane-dense output: (1, tb) block, batch along the lane dimension.
            out_specs=pl.BlockSpec((1, tb), lambda i: (0, i)),
        ),
        compiler_params=pltpu.CompilerParams(
            # Independent batch tiles -> megacore-shardable (2 TCs on v7x).
            dimension_semantics=("parallel",),
            # With tb <= ~2048 the working set (double-buffered x tiles + resident
            # weights + h temp) is well under 32 MiB on v5e / v6e / v7x.
            vmem_limit_bytes=32 * 1024 * 1024,
        ),
    )(x, w1, b1_row, w2_row, b2_vec)

    return out.reshape(bp)[:B].reshape(B, 1)


def _init_params(key):
    """Deterministic init mimicking nn.Linear's default (uniform +- 1/sqrt(fan_in))."""
    k1, k2, k3, k4 = jax.random.split(key, 4)
    lim1 = 1.0 / jnp.sqrt(768.0)
    lim2 = 1.0 / jnp.sqrt(256.0)
    w1 = jax.random.uniform(k1, (768, 256), jnp.float32, -lim1, lim1)  # stored (in, out)
    b1 = jax.random.uniform(k2, (256,),     jnp.float32, -lim1, lim1)
    w2 = jax.random.uniform(k3, (256, 1),   jnp.float32, -lim2, lim2)
    b2 = jax.random.uniform(k4, (1,),       jnp.float32, -lim2, lim2)
    return w1, b1, w2, b2


if __name__ == "__main__":
    key = jax.random.PRNGKey(0)
    kx, kp = jax.random.split(key)
    w1, b1, w2, b2 = _init_params(kp)

    def ref_fwd(x):
        # Pure-JAX f32 reference matching the PyTorch module.
        return jax.nn.sigmoid(jnp.maximum(x @ w1 + b1, 0.0) @ w2 + b2)

    params_f32 = prepare_nnue_params(w1, b1, w2, b2, compute_dtype=jnp.float32)
    params_bf16 = prepare_nnue_params(w1, b1, w2, b2, compute_dtype=jnp.bfloat16)  # default path

    # (batch, params, x dtype, tolerance):
    #   B=8   : tiny serving batch -> single sublane-aligned tile (no 128-row padding).
    #   B=300 : ragged batch -> 2 tiles with a PARTIAL trailing x block (no jnp.pad),
    #           verifying the boundary-masking dataflow flagged in the review.
    cases = [
        (8,   params_f32,  jnp.float32,  1e-5),
        (300, params_f32,  jnp.float32,  1e-5),
        (8,   params_bf16, jnp.bfloat16, 2e-2),
        (300, params_bf16, jnp.bfloat16, 2e-2),
    ]
    for i, (B, params, x_dtype, tol) in enumerate(cases):
        xf = jax.random.uniform(jax.random.fold_in(kx, i), (B, 768), jnp.float32)
        out = simple_nnue(xf.astype(x_dtype), params)   # caller supplies compute-dtype x
        jax.block_until_ready(out)
        ref = ref_fwd(xf)
        assert out.shape == (B, 1)
        assert jnp.allclose(out, ref, atol=tol, rtol=tol), (B, str(x_dtype))

    print("KERNEL_OK")
</pallas_src>

<mosaic_0001>
module attributes {stable_mosaic.version = 11 : i64} {
  func.func @_nnue_kernel(%arg0: i32, %arg1: memref<8x768xf32, #tpu.memory_space<vmem>>, %arg2: memref<768x256xf32, #tpu.memory_space<vmem>>, %arg3: memref<1x256xf32, #tpu.memory_space<vmem>>, %arg4: memref<1x256xf32, #tpu.memory_space<vmem>>, %arg5: memref<1xf32, #tpu.memory_space<smem>>, %arg6: memref<1x8xf32, #tpu.memory_space<vmem>>) attributes {dimension_semantics = [#tpu.dimension_semantics<parallel>], iteration_bounds = array<i64: 1>, scalar_prefetch = 0 : i64, scratch_operands = 0 : i64, tpu.core_type = #tpu.core_type<tc>, window_params = [{transform_indices = @transform_0, window_bounds = array<i64: 8, 768>}, {pipeline_mode = #tpu.pipeline_mode<synchronous>, transform_indices = @transform_1, window_bounds = array<i64: 768, 256>}, {pipeline_mode = #tpu.pipeline_mode<synchronous>, transform_indices = @transform_2, window_bounds = array<i64: 1, 256>}, {pipeline_mode = #tpu.pipeline_mode<synchronous>, transform_indices = @transform_3, window_bounds = array<i64: 1, 256>}, {transform_indices = @transform_4, window_bounds = array<i64: 1>}, {transform_indices = @transform_5, window_bounds = array<i64: 1, 8>}]} {
    %c0 = arith.constant 0 : index
    %c0_0 = arith.constant 0 : index
    %0 = vector.load %arg1[%c0, %c0_0] : memref<8x768xf32, #tpu.memory_space<vmem>>, vector<8x768xf32>
    %c0_1 = arith.constant 0 : index
    %c0_2 = arith.constant 0 : index
    %1 = vector.load %arg2[%c0_1, %c0_2] : memref<768x256xf32, #tpu.memory_space<vmem>>, vector<768x256xf32>
    %cst = arith.constant dense<0.000000e+00> : vector<8x256xf32>
    %2 = tpu.matmul %0, %1, %cst {dimension_numbers = #tpu.dot_dimension_numbers<[1], [0], [0], [1], [0, 0, 1, 1], [], []>} : vector<8x768xf32>, vector<768x256xf32>, vector<8x256xf32> -> vector<8x256xf32>
    %c0_3 = arith.constant 0 : index
    %c0_4 = arith.constant 0 : index
    %3 = vector.load %arg3[%c0_3, %c0_4] : memref<1x256xf32, #tpu.memory_space<vmem>>, vector<1x256xf32>
    %4 = vector.broadcast %3 : vector<1x256xf32> to vector<8x256xf32>
    %5 = arith.addf %2, %4 : vector<8x256xf32>
    %cst_5 = arith.constant 0.000000e+00 : f32
    %6 = vector.broadcast %cst_5 : f32 to vector<8x256xf32>
    %7 = arith.maximumf %5, %6 : vector<8x256xf32>
    %c0_6 = arith.constant 0 : index
    %c0_7 = arith.constant 0 : index
    %8 = vector.load %arg4[%c0_6, %c0_7] : memref<1x256xf32, #tpu.memory_space<vmem>>, vector<1x256xf32>
    %cst_8 = arith.constant dense<0.000000e+00> : vector<1x8xf32>
    %9 = tpu.matmul %8, %7, %cst_8 {dimension_numbers = #tpu.dot_dimension_numbers<[1], [1], [0], [0], [0, 0, 1, 0], [], []>} : vector<1x256xf32>, vector<8x256xf32>, vector<1x8xf32> -> vector<1x8xf32>
    %c0_9 = arith.constant 0 : index
    %10 = memref.load %arg5[%c0_9] : memref<1xf32, #tpu.memory_space<smem>>
    %11 = vector.broadcast %10 : f32 to vector<1x8xf32>
    %12 = arith.addf %9, %11 : vector<1x8xf32>
    %cst_10 = arith.constant 0.000000e+00 : f32
    %13 = vector.broadcast %cst_10 : f32 to vector<1x8xf32>
    %14 = arith.subf %13, %12 : vector<1x8xf32>
    %15 = math.exp %14 : vector<1x8xf32>
    %cst_11 = arith.constant 1.000000e+00 : f32
    %16 = vector.broadcast %cst_11 : f32 to vector<1x8xf32>
    %17 = arith.addf %16, %15 : vector<1x8xf32>
    %cst_12 = arith.constant 1.000000e+00 : f32
    %18 = vector.broadcast %cst_12 : f32 to vector<1x8xf32>
    %19 = arith.divf %18, %17 : vector<1x8xf32>
    %c0_13 = arith.constant 0 : index
    %c0_14 = arith.constant 0 : index
    %20 = vector.load %arg6[%c0_13, %c0_14] : memref<1x8xf32, #tpu.memory_space<vmem>>, vector<1x8xf32>
    tpu.vector_store %arg6[%c0_13, %c0_14], %19 {strides = array<i32>} : memref<1x8xf32, #tpu.memory_space<vmem>>, vector<1x8xf32>,
    return
  }
  func.func @transform_0(%arg0: i32) -> (i32, i32) {
    %c0_i32 = arith.constant 0 : i32
    %c0_i32_0 = arith.constant 0 : i32
    return %arg0, %c0_i32 : i32, i32
  }
  func.func @transform_1(%arg0: i32) -> (i32, i32) {
    %c0_i32 = arith.constant 0 : i32
    %c0_i32_0 = arith.constant 0 : i32
    %c0_i32_1 = arith.constant 0 : i32
    return %c0_i32, %c0_i32_0 : i32, i32
  }
  func.func @transform_2(%arg0: i32) -> (i32, i32) {
    %c0_i32 = arith.constant 0 : i32
    %c0_i32_0 = arith.constant 0 : i32
    %c0_i32_1 = arith.constant 0 : i32
    return %c0_i32, %c0_i32_0 : i32, i32
  }
  func.func @transform_3(%arg0: i32) -> (i32, i32) {
    %c0_i32 = arith.constant 0 : i32
    %c0_i32_0 = arith.constant 0 : i32
    %c0_i32_1 = arith.constant 0 : i32
    return %c0_i32, %c0_i32_0 : i32, i32
  }
  func.func @transform_4(%arg0: i32) -> i32 {
    %c0_i32 = arith.constant 0 : i32
    %c0_i32_0 = arith.constant 0 : i32
    return %c0_i32 : i32
  }
  func.func @transform_5(%arg0: i32) -> (i32, i32) {
    %c0_i32 = arith.constant 0 : i32
    %c0_i32_0 = arith.constant 0 : i32
    return %c0_i32, %arg0 : i32, i32
  }
}

</mosaic_0001>

<bundles_post_ra>
// kernel: tpu_custom_call.1
= control target key start
LH: loop header
LB: loop body
LE: loop exit
PB: predicated region body
PF: predicated region fallthrough
CT: control target
= control target key end

     0   :  { %11 = vsyncpa [#allocation4], 0  ;;  %s709_s0 = inlined_call_operand.hbm [shape: f32[8,768], index: 0, kind: input, shape index: {}]   ;;  %s710_s1 = inlined_call_operand.hbm [shape: f32[768,256], index: 1, kind: input, shape index: {}]   ;;  %s711_s2 = inlined_call_operand.vmem [shape: f32[1,256], index: 2, kind: input, shape index: {}]   ;;  %s712_s3 = inlined_call_operand.vmem [shape: f32[1,256], index: 3, kind: input, shape index: {}]   ;;  %s713_s4 = inlined_call_operand.<no memory space> [shape: f32[1], index: 4, kind: input, shape index: {}]   ;;  %s714_s5 = inlined_call_operand.hbm [shape: f32[1,8], index: 5, kind: output, shape index: {}]  }
   0x1   :  { %12 = vsyncpa [#allocation7], 0 }
   0x2   :  { %13 = vsyncpa [#allocation5], 0  ;;  %s656_s18 = smov [#allocation3]   ;;  %s657_s20 = smov [#allocation6]  }
   0x3   :  { %s20_s19 = sshll.u32 %s656_s18, 4  ;;  %s29_s21 = sshll.u32 %s657_s20, 4  ;;  %s21_s19 = int_to_ptr.vmem [resolvable:$true] %s20_s19  ;;  %s30_s21 = int_to_ptr.vmem [resolvable:$true] %s29_s21 }
   0x4   :  { %s598_s22 = scalar_lea.vmem %s21_s19, 768  ;;  %p603_p1 = scmp.lt.s32.totalorder %s21_s19, %s21_s19 }
   0x5   :  { %p599_p0 = scmp.ne.s32.totalorder %s21_s19, %s598_s22  ;;  %p604_p2 = scmp.lt.s32.totalorder %s598_s22, %s598_s22 }
   0x7   :  { %p605_p3 = por %p604_p2, %p603_p1 }
   0x9   :  { %p606_p4 = pnand %p605_p3, %p599_p0 }
   0xb   :  { %609 = shalt.err (!%p606_p4)
}
   0xc   :  { %23 = dma.hbm_to_vmem [thread:$0]  %s709_s0, 768, %s21_s19, [#allocation4]  }
   0xd   :  { %s618_s25 = scalar_lea.vmem %s30_s21, 24576  ;;  %p623_p6 = scmp.lt.s32.totalorder %s30_s21, %s30_s21 }
   0xe   :  { %p619_p5 = scmp.ne.s32.totalorder %s30_s21, %s618_s25  ;;  %p624_p7 = scmp.lt.s32.totalorder %s618_s25, %s618_s25 }
  0x10   :  { %p625_p8 = por %p624_p7, %p623_p6 }
  0x12   :  { %p626_p9 = pnand %p625_p8, %p619_p5 }
  0x14   :  { %629 = shalt.err (!%p626_p9)
}
  0x15   :  { %s658_s26 = smov 256   ;;  %s659_s27 = smov 16  }
  0x16   :  { %35 = dma.hbm_to_vmem [thread:$0]  %s710_s1, 24576, %s30_s21, [#allocation7], %s658_s26, %s658_s26, %s659_s27  }
  0x17   :  { %650 = dma.done.wait [#allocation4], 768  }
  0x18   :  { %651 = vsyncadd [#allocation4], 4294966528 }
  0x19   :  { %652 = dma.done.wait [#allocation7], 24576  }
  0x1a   :  { %653 = vsyncadd [#allocation7], 4294942720  ;;  %v85_v0 = vld [vmem:[#allocation6 + $0xf8] sm:$0xff]  ;;  %v84_v1 = vld [vmem:[#allocation6 + $0xf0] sm:$0xff]  ;;  %s660_s7 = smov [#allocation8]   ;;  %vm563_vm0 = vcmask 57344  }
  0x1b   :  { %v83_v2 = vld [vmem:[#allocation6 + $0xe8] sm:$0xff]  ;;  %258 = vmatprep.subr.mxu0 %v85_v0  ;;  %v149_v3 = vld [vmem:[#allocation6 + $0x2f8] sm:$0xff]  ;;  %v82_v4 = vld [vmem:[#allocation6 + $0xe0] sm:$0xff]  ;;  %s571_s8 = sshll.u32 %s660_s7, 4  ;;  %s572_s8 = int_to_ptr.vmem [resolvable:$true] %s571_s8 }
  0x1c   :  { %v148_v5 = vld [vmem:[#allocation6 + $0x2f0] sm:$0xff]  ;;  %259 = vmatpush1.msra.mxu0 %v84_v1  ;;  %329 = vmatprep.subr.mxu1 %v149_v3  ;;  %v81_v6 = vld [vmem:[#allocation6 + $0xd8] sm:$0xff]  ;;  %v147_v7 = vld [vmem:[#allocation6 + $0x2e8] sm:$0xff]  ;;  %s630_s9 = scalar_lea.vmem %s572_s8, 16  ;;  %s634_s10 = scalar_lea.vmem %s572_s8, 32 }
  0x1d   :  { %260 = vmatprep.subr.mxu0 %v83_v2  ;;  %330 = vmatpush1.msra.mxu1 %v148_v5  ;;  %v80_v8 = vld [vmem:[#allocation6 + $0xd0] sm:$0xff]  ;;  %v146_v9 = vld [vmem:[#allocation6 + $0x2e0] sm:$0xff]  ;;  %v145_v10 = vld [vmem:[#allocation6 + $0x2d8] sm:$0xff]  ;;  %p631_p10 = scmp.ne.s32.totalorder %s572_s8, %s630_s9  ;;  %p635_p11 = scmp.lt.s32.totalorder %s572_s8, %s572_s8 }
  0x1e   :  { %261 = vmatpush1.msra.mxu0 %v82_v4  ;;  %331 = vmatprep.subr.mxu1 %v147_v7  ;;  %v79_v11 = vld [vmem:[#allocation6 + $0xc8] sm:$0xff]  ;;  %v144_v12 = vld [vmem:[#allocation6 + $0x2d0] sm:$0xff]  ;;  %v78_v13 = vld [vmem:[#allocation6 + $0xc0] sm:$0xff]  ;;  %p636_p12 = scmp.lt.s32.totalorder %s634_s10, %s630_s9 }
  0x1f   :  { %262 = vmatprep.subr.mxu0 %v81_v6  ;;  %332 = vmatpush1.msra.mxu1 %v146_v9  ;;  %v143_v14 = vld [vmem:[#allocation6 + $0x2c8] sm:$0xff]  ;;  %v77_v15 = vld [vmem:[#allocation6 + $0xb8] sm:$0xff]  ;;  %v142_v16 = vld [vmem:[#allocation6 + $0x2c0] sm:$0xff] }
  0x20   :  { %263 = vmatpush1.msra.mxu0 %v80_v8  ;;  %333 = vmatprep.subr.mxu1 %v145_v10  ;;  %v76_v17 = vld [vmem:[#allocation6 + $0xb0] sm:$0xff]  ;;  %v141_v18 = vld [vmem:[#allocation6 + $0x2b8] sm:$0xff]  ;;  %v75_v19 = vld [vmem:[#allocation6 + $0xa8] sm:$0xff]  ;;  %p637_p13 = por %p636_p12, %p635_p11 }
  0x21   :  { %264 = vmatprep.subr.mxu0 %v79_v11  ;;  %334 = vmatpush1.msra.mxu1 %v144_v12  ;;  %v140_v20 = vld [vmem:[#allocation6 + $0x2b0] sm:$0xff]  ;;  %v74_v21 = vld [vmem:[#allocation6 + $0xa0] sm:$0xff]  ;;  %v139_v22 = vld [vmem:[#allocation6 + $0x2a8] sm:$0xff] }
  0x22   :  { %265 = vmatpush1.msra.mxu0 %v78_v13  ;;  %335 = vmatprep.subr.mxu1 %v143_v14  ;;  %v73_v23 = vld [vmem:[#allocation6 + $0x98] sm:$0xff]  ;;  %v138_v24 = vld [vmem:[#allocation6 + $0x2a0] sm:$0xff]  ;;  %v72_v25 = vld [vmem:[#allocation6 + $0x90] sm:$0xff]  ;;  %p638_p0 = pnand %p637_p13, %p631_p10 }
  0x23   :  { %266 = vmatprep.subr.mxu0 %v77_v15  ;;  %336 = vmatpush1.msra.mxu1 %v142_v16  ;;  %v137_v26 = vld [vmem:[#allocation6 + $0x298] sm:$0xff]  ;;  %v71_v27 = vld [vmem:[#allocation6 + $0x88] sm:$0xff]  ;;  %v136_v28 = vld [vmem:[#allocation6 + $0x290] sm:$0xff] }
  0x24   :  { %267 = vmatpush1.msra.mxu0 %v76_v17  ;;  %337 = vmatprep.subr.mxu1 %v141_v18  ;;  %v70_v29 = vld [vmem:[#allocation6 + $0x80] sm:$0xff]  ;;  %v135_v30 = vld [vmem:[#allocation6 + $0x288] sm:$0xff]  ;;  %v69_v31 = vld [vmem:[#allocation6 + $0x78] sm:$0xff] }
  0x25   :  { %268 = vmatprep.subr.mxu0 %v75_v19  ;;  %338 = vmatpush1.msra.mxu1 %v140_v20  ;;  %v134_v32 = vld [vmem:[#allocation6 + $0x280] sm:$0xff]  ;;  %v68_v33 = vld [vmem:[#allocation6 + $0x70] sm:$0xff]  ;;  %v133_v34 = vld [vmem:[#allocation6 + $0x278] sm:$0xff] }
  0x26   :  { %269 = vmatpush1.msra.mxu0 %v74_v21  ;;  %339 = vmatprep.subr.mxu1 %v139_v22  ;;  %v67_v35 = vld [vmem:[#allocation6 + $0x68] sm:$0xff]  ;;  %v132_v36 = vld [vmem:[#allocation6 + $0x270] sm:$0xff]  ;;  %v66_v37 = vld [vmem:[#allocation6 + $0x60] sm:$0xff] }
  0x27   :  { %270 = vmatprep.subr.mxu0 %v73_v23  ;;  %340 = vmatpush1.msra.mxu1 %v138_v24  ;;  %v131_v38 = vld [vmem:[#allocation6 + $0x268] sm:$0xff]  ;;  %v65_v39 = vld [vmem:[#allocation6 + $0x58] sm:$0xff]  ;;  %v130_v40 = vld [vmem:[#allocation6 + $0x260] sm:$0xff] }
  0x28   :  { %271 = vmatpush1.msra.mxu0 %v72_v25  ;;  %341 = vmatprep.subr.mxu1 %v137_v26  ;;  %v64_v41 = vld [vmem:[#allocation6 + $0x50] sm:$0xff]  ;;  %v129_v42 = vld [vmem:[#allocation6 + $0x258] sm:$0xff]  ;;  %v63_v43 = vld [vmem:[#allocation6 + $0x48] sm:$0xff] }
  0x29   :  { %272 = vmatprep.subr.mxu0 %v71_v27  ;;  %342 = vmatpush1.msra.mxu1 %v136_v28  ;;  %v128_v44 = vld [vmem:[#allocation6 + $0x250] sm:$0xff]  ;;  %v62_v45 = vld [vmem:[#allocation6 + $0x40] sm:$0xff]  ;;  %v127_v46 = vld [vmem:[#allocation6 + $0x248] sm:$0xff] }
  0x2a   :  { %273 = vmatpush1.msra.mxu0 %v70_v29  ;;  %343 = vmatprep.subr.mxu1 %v135_v30  ;;  %v61_v47 = vld [vmem:[#allocation6 + $0x38] sm:$0xff]  ;;  %v126_v48 = vld [vmem:[#allocation6 + $0x240] sm:$0xff]  ;;  %v60_v49 = vld [vmem:[#allocation6 + $0x30] sm:$0xff] }
  0x2b   :  { %274 = vmatprep.subr.mxu0 %v69_v31  ;;  %344 = vmatpush1.msra.mxu1 %v134_v32  ;;  %v125_v50 = vld [vmem:[#allocation6 + $0x238] sm:$0xff]  ;;  %v59_v51 = vld [vmem:[#allocation6 + $0x28] sm:$0xff]  ;;  %v124_v52 = vld [vmem:[#allocation6 + $0x230] sm:$0xff] }
  0x2c   :  { %275 = vmatpush1.msra.mxu0 %v68_v33  ;;  %345 = vmatprep.subr.mxu1 %v133_v34  ;;  %v58_v53 = vld [vmem:[#allocation6 + $0x20] sm:$0xff]  ;;  %v123_v54 = vld [vmem:[#allocation6 + $0x228] sm:$0xff]  ;;  %v57_v55 = vld [vmem:[#allocation6 + $0x18] sm:$0xff] }
  0x2d   :  { %276 = vmatprep.subr.mxu0 %v67_v35  ;;  %346 = vmatpush1.msra.mxu1 %v132_v36  ;;  %v122_v56 = vld [vmem:[#allocation6 + $0x220] sm:$0xff]  ;;  %v56_v57 = vld [vmem:[#allocation6 + $0x10] sm:$0xff]  ;;  %v121_v58 = vld [vmem:[#allocation6 + $0x218] sm:$0xff] }
  0x2e   :  { %277 = vmatpush1.msra.mxu0 %v66_v37  ;;  %347 = vmatprep.subr.mxu1 %v131_v38  ;;  %v55_v59 = vld [vmem:[#allocation6 + $0x8] sm:$0xff]  ;;  %v120_v60 = vld [vmem:[#allocation6 + $0x210] sm:$0xff]  ;;  %v54_v61 = vld [vmem:[#allocation6] sm:$0xff] }
  0x2f   :  { %278 = vmatprep.subr.mxu0 %v65_v39  ;;  %348 = vmatpush1.msra.mxu1 %v130_v40  ;;  %v119_v62 = vld [vmem:[#allocation6 + $0x208] sm:$0xff]  ;;  %v117_v63 = vld [vmem:[#allocation6 + $0x1f8] sm:$0xff]  ;;  %v118_v0 = vld [vmem:[#allocation6 + $0x200] sm:$0xff] }
  0x30   :  { %279 = vmatpush1.msra.mxu0 %v64_v41  ;;  %349 = vmatprep.subr.mxu1 %v129_v42  ;;  %v116_v1 = vld [vmem:[#allocation6 + $0x1f0] sm:$0xff]  ;;  %v181_v2 = vld [vmem:[#allocation6 + $0x3f8] sm:$0xff]  ;;  %v115_v3 = vld [vmem:[#allocation6 + $0x1e8] sm:$0xff] }
  0x31   :  { %280 = vmatprep.subr.mxu0 %v63_v43  ;;  %350 = vmatpush1.msra.mxu1 %v128_v44  ;;  %v180_v4 = vld [vmem:[#allocation6 + $0x3f0] sm:$0xff]  ;;  %v114_v5 = vld [vmem:[#allocation6 + $0x1e0] sm:$0xff]  ;;  %v179_v6 = vld [vmem:[#allocation6 + $0x3e8] sm:$0xff] }
  0x32   :  { %281 = vmatpush1.msra.mxu0 %v62_v45  ;;  %351 = vmatprep.subr.mxu1 %v127_v46  ;;  %v113_v7 = vld [vmem:[#allocation6 + $0x1d8] sm:$0xff]  ;;  %v178_v8 = vld [vmem:[#allocation6 + $0x3e0] sm:$0xff]  ;;  %v112_v9 = vld [vmem:[#allocation6 + $0x1d0] sm:$0xff] }
  0x33   :  { %282 = vmatprep.subr.mxu0 %v61_v47  ;;  %352 = vmatpush1.msra.mxu1 %v126_v48  ;;  %v177_v10 = vld [vmem:[#allocation6 + $0x3d8] sm:$0xff]  ;;  %v111_v11 = vld [vmem:[#allocation6 + $0x1c8] sm:$0xff]  ;;  %v176_v12 = vld [vmem:[#allocation6 + $0x3d0] sm:$0xff] }
  0x34   :  { %283 = vmatpush1.msra.mxu0 %v60_v49  ;;  %353 = vmatprep.subr.mxu1 %v125_v50  ;;  %v110_v13 = vld [vmem:[#allocation6 + $0x1c0] sm:$0xff]  ;;  %v175_v14 = vld [vmem:[#allocation6 + $0x3c8] sm:$0xff]  ;;  %v109_v15 = vld [vmem:[#allocation6 + $0x1b8] sm:$0xff] }
  0x35   :  { %284 = vmatprep.subr.mxu0 %v59_v51  ;;  %354 = vmatpush1.msra.mxu1 %v124_v52  ;;  %v174_v16 = vld [vmem:[#allocation6 + $0x3c0] sm:$0xff]  ;;  %v108_v17 = vld [vmem:[#allocation6 + $0x1b0] sm:$0xff]  ;;  %v173_v18 = vld [vmem:[#allocation6 + $0x3b8] sm:$0xff] }
  0x36   :  { %285 = vmatpush1.msra.mxu0 %v58_v53  ;;  %355 = vmatprep.subr.mxu1 %v123_v54  ;;  %v107_v19 = vld [vmem:[#allocation6 + $0x1a8] sm:$0xff]  ;;  %v172_v20 = vld [vmem:[#allocation6 + $0x3b0] sm:$0xff]  ;;  %v106_v21 = vld [vmem:[#allocation6 + $0x1a0] sm:$0xff] }
  0x37   :  { %286 = vmatprep.subr.mxu0 %v57_v55  ;;  %356 = vmatpush1.msra.mxu1 %v122_v56  ;;  %v171_v22 = vld [vmem:[#allocation6 + $0x3a8] sm:$0xff]  ;;  %v105_v23 = vld [vmem:[#allocation6 + $0x198] sm:$0xff]  ;;  %v170_v24 = vld [vmem:[#allocation6 + $0x3a0] sm:$0xff] }
  0x38   :  { %287 = vmatpush1.msra.mxu0 %v56_v57  ;;  %357 = vmatprep.subr.mxu1 %v121_v58  ;;  %v104_v25 = vld [vmem:[#allocation6 + $0x190] sm:$0xff]  ;;  %v169_v26 = vld [vmem:[#allocation6 + $0x398] sm:$0xff]  ;;  %v103_v27 = vld [vmem:[#allocation6 + $0x188] sm:$0xff] }
  0x39   :  { %288 = vmatprep.subr.mxu0 %v55_v59  ;;  %358 = vmatpush1.msra.mxu1 %v120_v60  ;;  %v168_v28 = vld [vmem:[#allocation6 + $0x390] sm:$0xff]  ;;  %v102_v29 = vld [vmem:[#allocation6 + $0x180] sm:$0xff]  ;;  %v167_v30 = vld [vmem:[#allocation6 + $0x388] sm:$0xff] }
  0x3a   :  { %289 = vmatpush1.msra.mxu0 %v54_v61  ;;  %359 = vmatprep.subr.mxu1 %v119_v62  ;;  %v101_v31 = vld [vmem:[#allocation6 + $0x178] sm:$0xff]  ;;  %v166_v32 = vld [vmem:[#allocation6 + $0x380] sm:$0xff]  ;;  %v100_v33 = vld [vmem:[#allocation6 + $0x170] sm:$0xff] }
  0x3b   :  { %290 = vmatprep.subr.mxu0 %v117_v63  ;;  %360 = vmatpush1.msra.mxu1 %v118_v0  ;;  %v165_v34 = vld [vmem:[#allocation6 + $0x378] sm:$0xff]  ;;  %v99_v35 = vld [vmem:[#allocation6 + $0x168] sm:$0xff]  ;;  %v164_v36 = vld [vmem:[#allocation6 + $0x370] sm:$0xff] }
  0x3c   :  { %291 = vmatpush2.msra.mxu0 %v116_v1  ;;  %361 = vmatprep.subr.mxu1 %v181_v2  ;;  %v98_v37 = vld [vmem:[#allocation6 + $0x160] sm:$0xff]  ;;  %v163_v38 = vld [vmem:[#allocation6 + $0x368] sm:$0xff]  ;;  %v97_v39 = vld [vmem:[#allocation6 + $0x158] sm:$0xff] }
  0x3d   :  { %292 = vmatprep.subr.mxu0 %v115_v3  ;;  %362 = vmatpush2.msra.mxu1 %v180_v4  ;;  %v162_v40 = vld [vmem:[#allocation6 + $0x360] sm:$0xff]  ;;  %v96_v41 = vld [vmem:[#allocation6 + $0x150] sm:$0xff]  ;;  %v161_v42 = vld [vmem:[#allocation6 + $0x358] sm:$0xff] }
  0x3e   :  { %293 = vmatpush2.msra.mxu0 %v114_v5  ;;  %363 = vmatprep.subr.mxu1 %v179_v6  ;;  %v95_v43 = vld [vmem:[#allocation6 + $0x148] sm:$0xff]  ;;  %v160_v44 = vld [vmem:[#allocation6 + $0x350] sm:$0xff]  ;;  %v94_v45 = vld [vmem:[#allocation6 + $0x140] sm:$0xff] }
  0x3f   :  { %294 = vmatprep.subr.mxu0 %v113_v7  ;;  %364 = vmatpush2.msra.mxu1 %v178_v8  ;;  %v159_v46 = vld [vmem:[#allocation6 + $0x348] sm:$0xff]  ;;  %v93_v47 = vld [vmem:[#allocation6 + $0x138] sm:$0xff]  ;;  %v158_v48 = vld [vmem:[#allocation6 + $0x340] sm:$0xff] }
  0x40   :  { %295 = vmatpush2.msra.mxu0 %v112_v9  ;;  %365 = vmatprep.subr.mxu1 %v177_v10  ;;  %v92_v49 = vld [vmem:[#allocation6 + $0x130] sm:$0xff]  ;;  %v157_v50 = vld [vmem:[#allocation6 + $0x338] sm:$0xff]  ;;  %v91_v51 = vld [vmem:[#allocation6 + $0x128] sm:$0xff] }
  0x41   :  { %296 = vmatprep.subr.mxu0 %v111_v11  ;;  %366 = vmatpush2.msra.mxu1 %v176_v12  ;;  %v156_v52 = vld [vmem:[#allocation6 + $0x330] sm:$0xff]  ;;  %v90_v53 = vld [vmem:[#allocation6 + $0x120] sm:$0xff]  ;;  %v155_v54 = vld [vmem:[#allocation6 + $0x328] sm:$0xff] }
  0x42   :  { %297 = vmatpush2.msra.mxu0 %v110_v13  ;;  %367 = vmatprep.subr.mxu1 %v175_v14  ;;  %v89_v55 = vld [vmem:[#allocation6 + $0x118] sm:$0xff]  ;;  %v154_v56 = vld [vmem:[#allocation6 + $0x320] sm:$0xff]  ;;  %v88_v57 = vld [vmem:[#allocation6 + $0x110] sm:$0xff] }
  0x43   :  { %298 = vmatprep.subr.mxu0 %v109_v15  ;;  %368 = vmatpush2.msra.mxu1 %v174_v16  ;;  %v153_v58 = vld [vmem:[#allocation6 + $0x318] sm:$0xff]  ;;  %v87_v59 = vld [vmem:[#allocation6 + $0x108] sm:$0xff]  ;;  %v86_v61 = vld [vmem:[#allocation6 + $0x100] sm:$0xff] }
  0x44   :  { %299 = vmatpush2.msra.mxu0 %v108_v17  ;;  %369 = vmatprep.subr.mxu1 %v173_v18  ;;  %v49_v60 = vld [vmem:[#allocation3 + $0x8] sm:$0xff]  ;;  %v152_v62 = vld [vmem:[#allocation6 + $0x310] sm:$0xff]  ;;  %v151_v0 = vld [vmem:[#allocation6 + $0x308] sm:$0xff] }
  0x45   :  { %300 = vmatprep.subr.mxu0 %v107_v19  ;;  %370 = vmatpush2.msra.mxu1 %v172_v20  ;;  %v48_v63 = vld [vmem:[#allocation3] sm:$0xff]  ;;  %v213_v1 = vld [vmem:[#allocation6 + $0x4f8] sm:$0xff]  ;;  %v150_v2 = vld [vmem:[#allocation6 + $0x300] sm:$0xff] }
  0x46   :  { %301 = vmatpush2.msra.mxu0 %v106_v21  ;;  %371 = vmatprep.subr.mxu1 %v171_v22  ;;  %v51_v3 = vld [vmem:[#allocation3 + $0x18] sm:$0xff]  ;;  %v212_v4 = vld [vmem:[#allocation6 + $0x4f0] sm:$0xff]  ;;  %v50_v5 = vld [vmem:[#allocation3 + $0x10] sm:$0xff] }
  0x47   :  { %302 = vmatprep.subr.mxu0 %v105_v23  ;;  %372 = vmatpush2.msra.mxu1 %v170_v24  ;;  %v211_v6 = vld [vmem:[#allocation6 + $0x4e8] sm:$0xff]  ;;  %v210_v7 = vld [vmem:[#allocation6 + $0x4e0] sm:$0xff]  ;;  %v53_v8 = vld [vmem:[#allocation3 + $0x28] sm:$0xff] }
  0x48   :  { %303 = vmatpush2.msra.mxu0 %v104_v25  ;;  %373 = vmatprep.subr.mxu1 %v169_v26  ;;  %v209_v9 = vld [vmem:[#allocation6 + $0x4d8] sm:$0xff]  ;;  %v208_v10 = vld [vmem:[#allocation6 + $0x4d0] sm:$0xff]  ;;  %v207_v11 = vld [vmem:[#allocation6 + $0x4c8] sm:$0xff] }
  0x49   :  { %304 = vmatprep.subr.mxu0 %v103_v27  ;;  %374 = vmatpush2.msra.mxu1 %v168_v28  ;;  %v206_v12 = vld [vmem:[#allocation6 + $0x4c0] sm:$0xff]  ;;  %v205_v13 = vld [vmem:[#allocation6 + $0x4b8] sm:$0xff]  ;;  %v204_v14 = vld [vmem:[#allocation6 + $0x4b0] sm:$0xff] }
  0x4a   :  { %305 = vmatpush2.msra.mxu0 %v102_v29  ;;  %375 = vmatprep.subr.mxu1 %v167_v30  ;;  %v203_v15 = vld [vmem:[#allocation6 + $0x4a8] sm:$0xff]  ;;  %v202_v16 = vld [vmem:[#allocation6 + $0x4a0] sm:$0xff]  ;;  %v201_v17 = vld [vmem:[#allocation6 + $0x498] sm:$0xff] }
  0x4b   :  { %306 = vmatprep.subr.mxu0 %v101_v31  ;;  %376 = vmatpush2.msra.mxu1 %v166_v32  ;;  %v200_v18 = vld [vmem:[#allocation6 + $0x490] sm:$0xff]  ;;  %v199_v19 = vld [vmem:[#allocation6 + $0x488] sm:$0xff]  ;;  %v198_v20 = vld [vmem:[#allocation6 + $0x480] sm:$0xff] }
  0x4c   :  { %307 = vmatpush2.msra.mxu0 %v100_v33  ;;  %377 = vmatprep.subr.mxu1 %v165_v34  ;;  %v197_v21 = vld [vmem:[#allocation6 + $0x478] sm:$0xff]  ;;  %v196_v22 = vld [vmem:[#allocation6 + $0x470] sm:$0xff]  ;;  %v195_v23 = vld [vmem:[#allocation6 + $0x468] sm:$0xff] }
  0x4d   :  { %308 = vmatprep.subr.mxu0 %v99_v35  ;;  %378 = vmatpush2.msra.mxu1 %v164_v36  ;;  %v194_v24 = vld [vmem:[#allocation6 + $0x460] sm:$0xff]  ;;  %v193_v25 = vld [vmem:[#allocation6 + $0x458] sm:$0xff]  ;;  %v192_v26 = vld [vmem:[#allocation6 + $0x450] sm:$0xff] }
  0x4e   :  { %309 = vmatpush2.msra.mxu0 %v98_v37  ;;  %379 = vmatprep.subr.mxu1 %v163_v38  ;;  %v191_v27 = vld [vmem:[#allocation6 + $0x448] sm:$0xff]  ;;  %v190_v28 = vld [vmem:[#allocation6 + $0x440] sm:$0xff]  ;;  %v189_v29 = vld [vmem:[#allocation6 + $0x438] sm:$0xff] }
  0x4f   :  { %310 = vmatprep.subr.mxu0 %v97_v39  ;;  %380 = vmatpush2.msra.mxu1 %v162_v40  ;;  %v188_v30 = vld [vmem:[#allocation6 + $0x430] sm:$0xff]  ;;  %v187_v31 = vld [vmem:[#allocation6 + $0x428] sm:$0xff]  ;;  %v186_v32 = vld [vmem:[#allocation6 + $0x420] sm:$0xff] }
  0x50   :  { %311 = vmatpush2.msra.mxu0 %v96_v41  ;;  %381 = vmatprep.subr.mxu1 %v161_v42  ;;  %v185_v33 = vld [vmem:[#allocation6 + $0x418] sm:$0xff]  ;;  %v184_v34 = vld [vmem:[#allocation6 + $0x410] sm:$0xff]  ;;  %v183_v35 = vld [vmem:[#allocation6 + $0x408] sm:$0xff] }
  0x51   :  { %312 = vmatprep.subr.mxu0 %v95_v43  ;;  %382 = vmatpush2.msra.mxu1 %v160_v44  ;;  %v182_v36 = vld [vmem:[#allocation6 + $0x400] sm:$0xff]  ;;  %v245_v37 = vld [vmem:[#allocation6 + $0x5f8] sm:$0xff]  ;;  %v244_v38 = vld [vmem:[#allocation6 + $0x5f0] sm:$0xff] }
  0x52   :  { %313 = vmatpush2.msra.mxu0 %v94_v45  ;;  %383 = vmatprep.subr.mxu1 %v159_v46  ;;  %v243_v39 = vld [vmem:[#allocation6 + $0x5e8] sm:$0xff]  ;;  %v242_v40 = vld [vmem:[#allocation6 + $0x5e0] sm:$0xff]  ;;  %v241_v41 = vld [vmem:[#allocation6 + $0x5d8] sm:$0xff] }
  0x53   :  { %314 = vmatprep.subr.mxu0 %v93_v47  ;;  %384 = vmatpush2.msra.mxu1 %v158_v48  ;;  %v240_v42 = vld [vmem:[#allocation6 + $0x5d0] sm:$0xff]  ;;  %v239_v43 = vld [vmem:[#allocation6 + $0x5c8] sm:$0xff]  ;;  %v238_v44 = vld [vmem:[#allocation6 + $0x5c0] sm:$0xff] }
  0x54   :  { %315 = vmatpush2.msra.mxu0 %v92_v49  ;;  %385 = vmatprep.subr.mxu1 %v157_v50  ;;  %v237_v45 = vld [vmem:[#allocation6 + $0x5b8] sm:$0xff]  ;;  %v236_v46 = vld [vmem:[#allocation6 + $0x5b0] sm:$0xff]  ;;  %v235_v47 = vld [vmem:[#allocation6 + $0x5a8] sm:$0xff] }
  0x55   :  { %316 = vmatprep.subr.mxu0 %v91_v51  ;;  %386 = vmatpush2.msra.mxu1 %v156_v52  ;;  %v234_v48 = vld [vmem:[#allocation6 + $0x5a0] sm:$0xff]  ;;  %v233_v49 = vld [vmem:[#allocation6 + $0x598] sm:$0xff]  ;;  %v232_v50 = vld [vmem:[#allocation6 + $0x590] sm:$0xff] }
  0x56   :  { %317 = vmatpush2.msra.mxu0 %v90_v53  ;;  %387 = vmatprep.subr.mxu1 %v155_v54  ;;  %v231_v51 = vld [vmem:[#allocation6 + $0x588] sm:$0xff]  ;;  %v230_v52 = vld [vmem:[#allocation6 + $0x580] sm:$0xff]  ;;  %v229_v53 = vld [vmem:[#allocation6 + $0x578] sm:$0xff] }
  0x57   :  { %318 = vmatprep.subr.mxu0 %v89_v55  ;;  %388 = vmatpush2.msra.mxu1 %v154_v56  ;;  %v228_v54 = vld [vmem:[#allocation6 + $0x570] sm:$0xff]  ;;  %v227_v55 = vld [vmem:[#allocation6 + $0x568] sm:$0xff]  ;;  %v226_v56 = vld [vmem:[#allocation6 + $0x560] sm:$0xff] }
  0x58   :  { %319 = vmatpush2.msra.mxu0 %v88_v57  ;;  %389 = vmatprep.subr.mxu1 %v153_v58  ;;  %v225_v57 = vld [vmem:[#allocation6 + $0x558] sm:$0xff]  ;;  %v224_v58 = vld [vmem:[#allocation6 + $0x550] sm:$0xff] }
  0x59   :  { %320 = vmatprep.subr.mxu0 %v87_v59  ;;  %322 = vmatprep.mubr.f32.mxu0 %v49_v60  ;;  %v223_v59 = vld [vmem:[#allocation6 + $0x548] sm:$0xff]  ;;  %v222_v60 = vld [vmem:[#allocation6 + $0x540] sm:$0xff] }
  0x5a   :  { %321 = vmatpush2.msra.mxu0 %v86_v61  ;;  %390 = vmatpush2.msra.mxu1 %v152_v62  ;;  %v221_v61 = vld [vmem:[#allocation6 + $0x538] sm:$0xff]  ;;  %v220_v62 = vld [vmem:[#allocation6 + $0x530] sm:$0xff] }
  0x5b   :  { %323 = vmatmul.mubr.f32.vlgmr.msra.gmra.mxu0 %v48_v63  ;;  %391 = vmatprep.subr.mxu1 %v151_v0  ;;  %v219_v63 = vld [vmem:[#allocation6 + $0x528] sm:$0xff]  ;;  %v218_v0 = vld [vmem:[#allocation6 + $0x520] sm:$0xff] }
  0x5c   :  { %400 = vmatprep.subr.mxu0 %v213_v1  ;;  %392 = vmatpush2.msra.mxu1 %v150_v2  ;;  %v217_v1 = vld [vmem:[#allocation6 + $0x518] sm:$0xff]  ;;  %v216_v2 = vld [vmem:[#allocation6 + $0x510] sm:$0xff] }
  0x5d   :  { %393 = vmatprep.mubr.f32.mxu1 %v51_v3  ;;  %401 = vmatpush1.msra.mxu0 %v212_v4  ;;  %v215_v3 = vld [vmem:[#allocation6 + $0x508] sm:$0xff]  ;;  %v214_v4 = vld [vmem:[#allocation6 + $0x500] sm:$0xff] }
  0x5e   :  { %394 = vmatmul.mubr.f32.vlgmr.msra.gmra.mxu1 %v50_v5  ;;  %402 = vmatprep.subr.mxu0 %v211_v6  ;;  %v52_v5 = vld [vmem:[#allocation3 + $0x20] sm:$0xff]  ;;  %v248_v6 = vlaneseq }
  0x5f   :  { %403 = vmatpush1.msra.mxu0 %v210_v7  ;;  %464 = vmatprep.mubr.f32.mxu0 %v53_v8 }
  0x60   :  { %404 = vmatprep.subr.mxu0 %v209_v9  ;;  %v249_v7 = vshrl.u32 %v248_v6, 7  ;;  %v473_v9 = vld [vmem:[%s712_s3] sm:$0x3] }
  0x61   :  { %405 = vmatpush1.msra.mxu0 %v208_v10 }
  0x62   :  { %406 = vmatprep.subr.mxu0 %v207_v11  ;;  %v254_v8 = vsub.s32 1, %v249_v7  ;;  %v250_v11 = vsub.s32 0, %v249_v7 }
  0x63   :  { %407 = vmatpush1.msra.mxu0 %v206_v12  ;;  %v246_v12 = vld [vmem:[%s711_s2] sm:$0x3] }
  0x64   :  { %408 = vmatprep.subr.mxu0 %v205_v13  ;;  %v484_v10 = vrot.slane %v473_v9, %v254_v8 }
  0x65   :  { %409 = vmatpush1.msra.mxu0 %v204_v14  ;;  %v251_v14 = vrot.slane %v246_v12, %v250_v11 }
  0x66   :  { %410 = vmatprep.subr.mxu0 %v203_v15  ;;  %551 = vmatprep.mubr.f32.mxu1 %v484_v10  ;;  %v255_v15 = vrot.slane %v246_v12, %v254_v8 }
  0x67   :  { %411 = vmatpush1.msra.mxu0 %v202_v16 }
  0x68   :  { %412 = vmatprep.subr.mxu0 %v201_v17 }
  0x69   :  { %413 = vmatpush1.msra.mxu0 %v200_v18 }
  0x6a   :  { %414 = vmatprep.subr.mxu0 %v199_v19 }
  0x6b   :  { %415 = vmatpush1.msra.mxu0 %v198_v20 }
  0x6c   :  { %416 = vmatprep.subr.mxu0 %v197_v21 }
  0x6d   :  { %417 = vmatpush1.msra.mxu0 %v196_v22 }
  0x6e   :  { %418 = vmatprep.subr.mxu0 %v195_v23 }
  0x6f   :  { %419 = vmatpush1.msra.mxu0 %v194_v24 }
  0x70   :  { %420 = vmatprep.subr.mxu0 %v193_v25 }
  0x71   :  { %421 = vmatpush1.msra.mxu0 %v192_v26 }
  0x72   :  { %422 = vmatprep.subr.mxu0 %v191_v27 }
  0x73   :  { %423 = vmatpush1.msra.mxu0 %v190_v28 }
  0x74   :  { %424 = vmatprep.subr.mxu0 %v189_v29  ;;  %v480_v29 = vrot.slane %v473_v9, %v250_v11 }
  0x75   :  { %425 = vmatpush1.msra.mxu0 %v188_v30  ;;  %v475_v30 = vstv %s713_s4 }
  0x76   :  { %426 = vmatprep.subr.mxu0 %v187_v31 }
  0x77   :  { %427 = vmatpush1.msra.mxu0 %v186_v32 }
  0x78   :  { %428 = vmatprep.subr.mxu0 %v185_v33 }
  0x79   :  { %429 = vmatpush1.msra.mxu0 %v184_v34 }
  0x7a   :  { %430 = vmatprep.subr.mxu0 %v183_v35 }
  0x7b   :  { %431 = vmatpush1.msra.mxu0 %v182_v36 }
  0x7c   :  { %432 = vmatprep.subr.mxu0 %v245_v37 }
  0x7d   :  { %433 = vmatpush2.msra.mxu0 %v244_v38 }
  0x7e   :  { %434 = vmatprep.subr.mxu0 %v243_v39 }
  0x7f   :  { %435 = vmatpush2.msra.mxu0 %v242_v40 }
  0x80   :  { %436 = vmatprep.subr.mxu0 %v241_v41 }
  0x81   :  { %437 = vmatpush2.msra.mxu0 %v240_v42 }
  0x82   :  { %438 = vmatprep.subr.mxu0 %v239_v43 }
  0x83   :  { %439 = vmatpush2.msra.mxu0 %v238_v44 }
  0x84   :  { %440 = vmatprep.subr.mxu0 %v237_v45 }
  0x85   :  { %441 = vmatpush2.msra.mxu0 %v236_v46 }
  0x86   :  { %442 = vmatprep.subr.mxu0 %v235_v47 }
  0x87   :  { %443 = vmatpush2.msra.mxu0 %v234_v48 }
  0x88   :  { %444 = vmatprep.subr.mxu0 %v233_v49 }
  0x89   :  { %445 = vmatpush2.msra.mxu0 %v232_v50 }
  0x8a   :  { %446 = vmatprep.subr.mxu0 %v231_v51 }
  0x8b   :  { %447 = vmatpush2.msra.mxu0 %v230_v52 }
  0x8c   :  { %448 = vmatprep.subr.mxu0 %v229_v53 }
  0x8d   :  { %449 = vmatpush2.msra.mxu0 %v228_v54 }
  0x8e   :  { %450 = vmatprep.subr.mxu0 %v227_v55 }
  0x8f   :  { %451 = vmatpush2.msra.mxu0 %v226_v56 }
  0x90   :  { %452 = vmatprep.subr.mxu0 %v225_v57 }
  0x91   :  { %453 = vmatpush2.msra.mxu0 %v224_v58 }
  0x92   :  { %454 = vmatprep.subr.mxu0 %v223_v59 }
  0x93   :  { %455 = vmatpush2.msra.mxu0 %v222_v60 }
  0x94   :  { %456 = vmatprep.subr.mxu0 %v221_v61 }
  0x95   :  { %457 = vmatpush2.msra.mxu0 %v220_v62 }
  0x96   :  { %458 = vmatprep.subr.mxu0 %v219_v63 }
  0x97   :  { %459 = vmatpush2.msra.mxu0 %v218_v0 }
  0x98   :  { %460 = vmatprep.subr.mxu0 %v217_v1 }
  0x99   :  { %461 = vmatpush2.msra.mxu0 %v216_v2 }
  0x9a   :  { %462 = vmatprep.subr.mxu0 %v215_v3 }
  0x9b   :  { %463 = vmatpush2.msra.mxu0 %v214_v4 }
  0x9c   :  { %465 = vmatmul.mubr.f32.vlgmr.msra.gmra.mxu0 %v52_v5 }
 0x11b   :  { %v324_v13 = vpop.f32.mrf.mxu0 }
 0x11c   :  { %v325_v18 = vadd.f32 %v324_v13, %v251_v14 }
 0x11d   :  { %v326_v16 = vpop.f32.mrf.mxu0 }
 0x11e   :  { %v395_v17 = vpop.f32.mrf.mxu1  ;;  %v327_v19 = vadd.f32 %v326_v16, %v255_v15 }
 0x11f   :  { %v396_v21 = vadd.f32 %v395_v17, %v325_v18 }
 0x120   :  { %v397_v20 = vpop.f32.mrf.mxu1 }
 0x121   :  { %v398_v23 = vadd.f32 %v397_v20, %v327_v19 }
 0x15c   :  { %v466_v22 = vpop.f32.mrf.mxu0 }
 0x15d   :  { %v467_v24 = vadd.f32 %v466_v22, %v396_v21 }
 0x15e   :  { %v468_v25 = vpop.f32.mrf.mxu0 }
 0x15f   :  { %v469_v26 = vadd.f32 %v468_v25, %v398_v23  ;;  %v471_v28 = vmax.f32 %v467_v24, 0.0 }
 0x161   :  { %v472_v27 = vmax.f32 %v469_v26, 0.0 }
 0x163   :  { %517 = vmatprep.subr.mxu1 %v472_v27 }
 0x164   :  { %518 = vmatpush1.xpose.msra.mxu1 %v471_v28 }
 0x167   :  { %552 = vmatmul.mubr.f32.vlgmr.msra.gmra.mxu1 %v480_v29 }
 0x227   :  { %v553_v31 = vpop.f32.mrf.mxu1 }
 0x228   :  { %v554_v32 = vadd.f32 %v553_v31, %v475_v30 }
 0x229   :  { %v555_v33 = vpop.f32.mrf.mxu1 }
 0x22a   :  { %v557_v34 = vsub.f32 0.0, %v554_v32 }
 0x22c   :  { %v558_v35 = vmul.f32 1.442695, %v557_v34 }
 0x22e   :  { %586 = vpow2.f32 %v558_v35 }
 0x23b   :  { %v587_v36 = vpop.eup %586 }
 0x23c   :  { %v560_v37 = vadd.f32 1.0, %v587_v36 }
 0x23e   :  { %588 = vrcp.f32 %v560_v37 }
 0x24b   :  { %v589_v38 = vpop.eup %588 }
 0x24c   :  { %564 = vst.msk [vmem:[#allocation8] sm:$0x1] %vm563_vm0, %v589_v38 }
 0x24d   :  { %641 = shalt.err (!%p638_p0)
}
 0x24e   :  { %574 = dma.vmem_to_hbm [thread:$0]  %s572_s8, 16, %s714_s5, [#allocation5]  }
 0x24f   :  { %654 = dma.done.wait [#allocation5], 16  }
 0x250   :  { %655 = vsyncadd [#allocation5], 4294967280 }
 0x251   :  { %578 = vsyncpa [#allocation4], 1 }
 0x252   :  { %579 = vsyncpa [#allocation7], 1 }
 0x253   :  { %580 = vsyncpa [#allocation5], 1 }

</bundles_post_ra>
